<compile_context>
chip_gen: v6e
topology: v6e:2x2x1
jax: 0.10.0
libtpu: 0.0.40
codegen_flags: <defaults>
</compile_context>

<pallas_src>
import math

import jax
import jax.numpy as jnp
from jax.experimental import pallas as pl
from jax.experimental.pallas import tpu as pltpu


def _round_up(x, m):
    return ((x + m - 1) // m) * m


def _pick_tile_128(n_pad, target):
    """Largest multiple of 128 dividing n_pad that is <= max(target, 128)."""
    t = min(n_pad, max(target, 128))
    t -= t % 128
    t = max(t, 128)
    while n_pad % t:
        t -= 128
    return t


def _pad_and_tile(n):
    """Pad an entity count and pick tiles for its two roles.

    Returns (n_pad, tile_m, tile_k):
      * n_pad : padded count (multiple of 128; multiple of 512 for large n).
      * tile_m: row-role tile (multiple of 8, divides n_pad, <= 1024, and
                >= 2 blocks whenever possible so v7x's two TCs both get work).
      * tile_k: contraction-role tile (multiple of 128 -- lane dim of the
                support block -- divides n_pad, <= 1024).
    """
    n_pad = _round_up(n, 128) if n <= 1024 else _round_up(n, 512)

    # Contraction tile: lane-dense, as large as possible up to 1024.
    tile_k = _pick_tile_128(n_pad, 1024)

    # Row tile: aim for at least two blocks (v7x megacore), cap at 1024.
    tm = min(1024, max(8, n_pad // 2))
    tm -= tm % 8
    tm = max(tm, 8)
    while n_pad % tm:
        tm -= 8
    return n_pad, tm, tile_k


# ---------------------------------------------------------------------------
# Fused kernel:
#   out[m_blk] = relu( sum_{s,k} sup[s][m_blk, k_blk] @ (x[k_blk] @ W_cum[s]) )
#
#   grid = (M_tiles [parallel], K_tiles [arbitrary], S [arbitrary, innermost])
#   The (tile_m, dp) f32 output block is VMEM-resident across the whole (k, s)
#   reduction and doubles as the accumulator.  The projection is a tiny
#   input_dim-deep contraction kept in f32; its result is cast to bf16 so the
#   dominant support matmul runs the MXU at bf16 rate.
# ---------------------------------------------------------------------------
def _fused_support_reduce_kernel(sup_ref, x_ref, w_ref, out_ref):
    k = pl.program_id(1)
    s = pl.program_id(2)

    @pl.when(jnp.logical_and(k == 0, s == 0))
    def _init():
        out_ref[...] = jnp.zeros_like(out_ref)

    # Small f32 projection: (tile_k, input_dim) @ (input_dim, dp).
    proj = jnp.dot(x_ref[...], w_ref[...], preferred_element_type=jnp.float32)

    # Dominant matmul in bf16 x bf16 (MXU native rate); f32 accumulate.
    out_ref[...] += jnp.dot(sup_ref[...], proj.astype(jnp.bfloat16),
                            preferred_element_type=jnp.float32)

    @pl.when(jnp.logical_and(k == pl.num_programs(1) - 1,
                             s == pl.num_programs(2) - 1))
    def _finalize():
        out_ref[...] = jnp.maximum(out_ref[...], 0.0)


def _fused_support_reduce(sup_pad, x_pad, w_cum, *, tile_m, tile_k, dp):
    """sup_pad: (S, m_pad, k_pad) bf16; x_pad: (k_pad, input_dim) f32;
       w_cum : (S, input_dim, dp) f32.  Returns (m_pad, dp) f32."""
    num_support, m_pad, k_pad = sup_pad.shape
    input_dim = x_pad.shape[1]
    grid = (m_pad // tile_m, k_pad // tile_k, num_support)

    return pl.pallas_call(
        _fused_support_reduce_kernel,
        grid_spec=pltpu.PrefetchScalarGridSpec(
            num_scalar_prefetch=0,
            grid=grid,
            in_specs=[
                # Support tile changes every step (bf16 -> half the HBM bytes).
                pl.BlockSpec((pl.Squeezed(), tile_m, tile_k),
                             lambda m, k, s: (s, m, k)),
                # Other-side inputs: block index depends only on k, so with s
                # innermost this is DMA'd once per (m, k) group.
                pl.BlockSpec((tile_k, input_dim), lambda m, k, s: (k, 0)),
                # Tiny cumulative-weight slab for support s.
                pl.BlockSpec((pl.Squeezed(), input_dim, dp),
                             lambda m, k, s: (s, 0, 0)),
            ],
            out_specs=pl.BlockSpec((tile_m, dp), lambda m, k, s: (m, 0)),
        ),
        out_shape=jax.ShapeDtypeStruct((m_pad, dp), jnp.float32),
        compiler_params=pltpu.CompilerParams(
            dimension_semantics=("parallel", "arbitrary", "arbitrary"),
            # Working set (2x sup + 2x x + 2x w buffers + resident out tile)
            # is budgeted well below this; explicit limit keeps the kernel
            # safe under v7x's 64 MiB VMEM and above v5e's 16 MiB default.
            vmem_limit_bytes=48 * 1024 * 1024),
    )(sup_pad, x_pad, w_cum)


# ---------------------------------------------------------------------------
# Wrapper: full SumGCNEncoder forward.
# ---------------------------------------------------------------------------
def sum_gcn_encoder(user_supports, item_supports, user_inputs, item_inputs, weight):
    """user_supports: (S, n_users, n_items) dense adjacency (bf16 or f32)
       item_supports: (S, n_items, n_users)
       user_inputs  : (n_users, input_dim) f32
       item_inputs  : (n_items, input_dim) f32
       weight       : (S, input_dim, output_dim) f32 (per-rating slices)"""
    num_support, n_users, n_items = user_supports.shape
    input_dim, output_dim = weight.shape[1], weight.shape[2]

    dp = _round_up(output_dim, 128)                         # lane-dense output
    n_users_pad, tile_u_m, tile_u_k = _pad_and_tile(n_users)
    n_items_pad, tile_i_m, tile_i_k = _pad_and_tile(n_items)

    # Tiny prefix-sum of per-rating weights, output dim padded lane-dense.
    w_cum = jnp.cumsum(weight.astype(jnp.float32), axis=0)          # (S, in, out)
    w_cum = jnp.pad(w_cum, ((0, 0), (0, 0), (0, dp - output_dim)))  # (S, in, dp)

    # Zero-pad inputs / supports; zero padding contributes nothing to the sums.
    uin = jnp.pad(user_inputs.astype(jnp.float32),
                  ((0, n_users_pad - n_users), (0, 0)))
    iin = jnp.pad(item_inputs.astype(jnp.float32),
                  ((0, n_items_pad - n_items), (0, 0)))
    usup = jnp.pad(user_supports.astype(jnp.bfloat16),
                   ((0, 0), (0, n_users_pad - n_users), (0, n_items_pad - n_items)))
    isup = jnp.pad(item_supports.astype(jnp.bfloat16),
                   ((0, 0), (0, n_items_pad - n_items), (0, n_users_pad - n_users)))

    # user_out consumes item features; item_out consumes user features.
    u_out = _fused_support_reduce(usup, iin, w_cum,
                                  tile_m=tile_u_m, tile_k=tile_i_k, dp=dp)
    i_out = _fused_support_reduce(isup, uin, w_cum,
                                  tile_m=tile_i_m, tile_k=tile_u_k, dp=dp)

    return u_out[:n_users, :output_dim], i_out[:n_items, :output_dim]


# ---------------------------------------------------------------------------
# Pure-JAX f32 reference (module semantics; shares the bf16 adjacency values).
# ---------------------------------------------------------------------------
def _reference(user_supports, item_supports, user_inputs, item_inputs, weight):
    hp = jax.lax.Precision.HIGHEST
    usup = user_supports.astype(jnp.float32)
    isup = item_supports.astype(jnp.float32)
    uin = user_inputs.astype(jnp.float32)
    iin = item_inputs.astype(jnp.float32)
    num_support = weight.shape[0]
    w = jnp.zeros(weight.shape[1:], jnp.float32)
    user_hidden = 0.0
    item_hidden = 0.0
    for i in range(num_support):
        w = w + weight[i]
        tmp_u = jnp.dot(uin, w, precision=hp)
        tmp_v = jnp.dot(iin, w, precision=hp)
        user_hidden = user_hidden + jnp.dot(usup[i], tmp_v, precision=hp)
        item_hidden = item_hidden + jnp.dot(isup[i], tmp_u, precision=hp)
    return jax.nn.relu(user_hidden), jax.nn.relu(item_hidden)


if __name__ == "__main__":
    # Small synthetic shapes consistent with the module's forward.
    num_support = 5
    n_users, n_items = 48, 80
    input_dim, output_dim = 32, 16

    key = jax.random.PRNGKey(0)
    k1, k2, k3, k4, k5 = jax.random.split(key, 5)

    # Kaiming-uniform-style init for weight (input_dim, output_dim*num_support),
    # reshaped to per-rating slices stacked on a leading num_support axis.
    bound = math.sqrt(6.0 / input_dim)
    weight_flat = jax.random.uniform(
        k1, (input_dim, output_dim * num_support), jnp.float32, -bound, bound)
    weight = jnp.transpose(
        weight_flat.reshape(input_dim, output_dim, num_support), (2, 0, 1))

    user_inputs = jax.random.normal(k2, (n_users, input_dim), jnp.float32)
    item_inputs = jax.random.normal(k3, (n_items, input_dim), jnp.float32)

    # Dense stand-ins for the normalized sparse adjacency matrices, stored in
    # bf16 (halves HBM traffic for the memory-bound support matmuls).
    user_supports = (jax.random.uniform(
        k4, (num_support, n_users, n_items), jnp.float32) / n_items
    ).astype(jnp.bfloat16)
    item_supports = (jax.random.uniform(
        k5, (num_support, n_items, n_users), jnp.float32) / n_users
    ).astype(jnp.bfloat16)

    u_out, i_out = sum_gcn_encoder(
        user_supports, item_supports, user_inputs, item_inputs, weight)
    jax.block_until_ready((u_out, i_out))

    u_ref, i_ref = _reference(
        user_supports, item_supports, user_inputs, item_inputs, weight)
    assert u_out.shape == (n_users, output_dim)
    assert i_out.shape == (n_items, output_dim)
    # Projection result travels through bf16 into the support matmul; f32
    # accumulation keeps the error well inside this tolerance.
    assert jnp.allclose(u_out, u_ref, atol=1e-2, rtol=1e-2)
    assert jnp.allclose(i_out, i_ref, atol=1e-2, rtol=1e-2)

    print("KERNEL_OK")
</pallas_src>

<mosaic_0001>
module attributes {stable_mosaic.version = 11 : i64} {
  func.func @_fused_support_reduce_kernel(%arg0: i32, %arg1: i32, %arg2: i32, %arg3: memref<1x64x128xbf16, #tpu.memory_space<vmem>>, %arg4: memref<128x32xf32, #tpu.memory_space<vmem>>, %arg5: memref<1x32x128xf32, #tpu.memory_space<vmem>>, %arg6: memref<64x128xf32, #tpu.memory_space<vmem>>) attributes {dimension_semantics = [#tpu.dimension_semantics<parallel>, #tpu.dimension_semantics<arbitrary>, #tpu.dimension_semantics<arbitrary>], iteration_bounds = array<i64: 2, 1, 5>, scalar_prefetch = 0 : i64, scratch_operands = 0 : i64, tpu.core_type = #tpu.core_type<tc>, window_params = [{transform_indices = @transform_0, window_bounds = array<i64: 1, 64, 128>}, {transform_indices = @transform_1, window_bounds = array<i64: 128, 32>}, {transform_indices = @transform_2, window_bounds = array<i64: 1, 32, 128>}, {transform_indices = @transform_3, window_bounds = array<i64: 64, 128>}]} {
    %c0_i32 = arith.constant 0 : i32
    %0 = arith.cmpi eq, %arg1, %c0_i32 : i32
    %c0_i32_0 = arith.constant 0 : i32
    %1 = arith.cmpi eq, %arg2, %c0_i32_0 : i32
    %2 = arith.andi %0, %1 : i1
    %3 = arith.extui %2 : i1 to i32
    %c0_i32_1 = arith.constant 0 : i32
    %4 = arith.cmpi ne, %3, %c0_i32_1 : i32
    scf.if %4 {
      %cst_16 = arith.constant 0.000000e+00 : f32
      %21 = vector.broadcast %cst_16 : f32 to vector<64x128xf32>
      %c0_17 = arith.constant 0 : index
      %c0_18 = arith.constant 0 : index
      %22 = vector.load %arg6[%c0_17, %c0_18] : memref<64x128xf32, #tpu.memory_space<vmem>>, vector<64x128xf32>
      tpu.vector_store %arg6[%c0_17, %c0_18], %21 {strides = array<i32>} : memref<64x128xf32, #tpu.memory_space<vmem>>, vector<64x128xf32>,
    } else {
    }
    %c0 = arith.constant 0 : index
    %c0_2 = arith.constant 0 : index
    %5 = vector.load %arg4[%c0, %c0_2] : memref<128x32xf32, #tpu.memory_space<vmem>>, vector<128x32xf32>
    %c0_3 = arith.constant 0 : index
    %c0_4 = arith.constant 0 : index
    %c0_5 = arith.constant 0 : index
    %6 = vector.load %arg5[%c0_3, %c0_4, %c0_5] : memref<1x32x128xf32, #tpu.memory_space<vmem>>, vector<1x32x128xf32>
    %7 = vector.shape_cast %6 : vector<1x32x128xf32> to vector<32x128xf32>
    %cst = arith.constant dense<0.000000e+00> : vector<128x128xf32>
    %8 = tpu.matmul %5, %7, %cst {dimension_numbers = #tpu.dot_dimension_numbers<[1], [0], [0], [1], [0, 0, 1, 1], [], []>} : vector<128x32xf32>, vector<32x128xf32>, vector<128x128xf32> -> vector<128x128xf32>
    %c0_6 = arith.constant 0 : index
    %c0_7 = arith.constant 0 : index
    %9 = vector.load %arg6[%c0_6, %c0_7] : memref<64x128xf32, #tpu.memory_space<vmem>>, vector<64x128xf32>
    %c0_8 = arith.constant 0 : index
    %c0_9 = arith.constant 0 : index
    %c0_10 = arith.constant 0 : index
    %10 = vector.load %arg3[%c0_8, %c0_9, %c0_10] : memref<1x64x128xbf16, #tpu.memory_space<vmem>>, vector<1x64x128xbf16>
    %11 = vector.shape_cast %10 : vector<1x64x128xbf16> to vector<64x128xbf16>
    %12 = arith.truncf %8 : vector<128x128xf32> to vector<128x128xbf16>
    %cst_11 = arith.constant dense<0.000000e+00> : vector<64x128xf32>
    %13 = tpu.matmul %11, %12, %cst_11 {dimension_numbers = #tpu.dot_dimension_numbers<[1], [0], [0], [1], [0, 0, 1, 1], [], []>} : vector<64x128xbf16>, vector<128x128xbf16>, vector<64x128xf32> -> vector<64x128xf32>
    %14 = arith.addf %9, %13 : vector<64x128xf32>
    %c0_12 = arith.constant 0 : index
    %c0_13 = arith.constant 0 : index
    %15 = vector.load %arg6[%c0_12, %c0_13] : memref<64x128xf32, #tpu.memory_space<vmem>>, vector<64x128xf32>
    tpu.vector_store %arg6[%c0_12, %c0_13], %14 {strides = array<i32>} : memref<64x128xf32, #tpu.memory_space<vmem>>, vector<64x128xf32>,
    %c0_i32_14 = arith.constant 0 : i32
    %16 = arith.cmpi eq, %arg1, %c0_i32_14 : i32
    %c4_i32 = arith.constant 4 : i32
    %17 = arith.cmpi eq, %arg2, %c4_i32 : i32
    %18 = arith.andi %16, %17 : i1
    %19 = arith.extui %18 : i1 to i32
    %c0_i32_15 = arith.constant 0 : i32
    %20 = arith.cmpi ne, %19, %c0_i32_15 : i32
    scf.if %20 {
      %c0_16 = arith.constant 0 : index
      %c0_17 = arith.constant 0 : index
      %21 = vector.load %arg6[%c0_16, %c0_17] : memref<64x128xf32, #tpu.memory_space<vmem>>, vector<64x128xf32>
      %cst_18 = arith.constant 0.000000e+00 : f32
      %22 = vector.broadcast %cst_18 : f32 to vector<64x128xf32>
      %23 = arith.maximumf %21, %22 : vector<64x128xf32>
      %c0_19 = arith.constant 0 : index
      %c0_20 = arith.constant 0 : index
      %24 = vector.load %arg6[%c0_19, %c0_20] : memref<64x128xf32, #tpu.memory_space<vmem>>, vector<64x128xf32>
      tpu.vector_store %arg6[%c0_19, %c0_20], %23 {strides = array<i32>} : memref<64x128xf32, #tpu.memory_space<vmem>>, vector<64x128xf32>,
    } else {
    }
    return
  }
  func.func @transform_0(%arg0: i32, %arg1: i32, %arg2: i32) -> (i32, i32, i32) {
    %c0_i32 = arith.constant 0 : i32
    return %arg2, %arg0, %arg1 : i32, i32, i32
  }
  func.func @transform_1(%arg0: i32, %arg1: i32, %arg2: i32) -> (i32, i32) {
    %c0_i32 = arith.constant 0 : i32
    %c0_i32_0 = arith.constant 0 : i32
    return %arg1, %c0_i32 : i32, i32
  }
  func.func @transform_2(%arg0: i32, %arg1: i32, %arg2: i32) -> (i32, i32, i32) {
    %c0_i32 = arith.constant 0 : i32
    %c0_i32_0 = arith.constant 0 : i32
    %c0_i32_1 = arith.constant 0 : i32
    return %arg2, %c0_i32, %c0_i32_0 : i32, i32, i32
  }
  func.func @transform_3(%arg0: i32, %arg1: i32, %arg2: i32) -> (i32, i32) {
    %c0_i32 = arith.constant 0 : i32
    %c0_i32_0 = arith.constant 0 : i32
    return %arg0, %c0_i32 : i32, i32
  }
}

</mosaic_0001>

<bundles_post_ra>
// kernel: tpu_custom_call.1
= control target key start
LH: loop header
LB: loop body
LE: loop exit
PB: predicated region body
PF: predicated region fallthrough
CT: control target
= control target key end

     0   :  { %8 = vsyncpa [#allocation3], 0  ;;  %s1516_s0 = inlined_call_operand.hbm [shape: bf16[5,128,128], index: 0, kind: input, shape index: {}]   ;;  %s1517_s1 = inlined_call_operand.vmem [shape: f32[128,32], index: 1, kind: input, shape index: {}]   ;;  %s1518_s2 = inlined_call_operand.vmem [shape: f32[5,32,128], index: 2, kind: input, shape index: {}]   ;;  %s1519_s3 = inlined_call_operand.hbm [shape: f32[128,128], index: 3, kind: output, shape index: {}]  }
   0x1   :  { %10 = vsyncpa [#allocation3 + $0x1], 0 }
   0x2   :  { %11 = vsyncpa [#allocation4], 0 }
   0x3   :  { %13 = vsyncpa [#allocation4 + $0x1], 0  ;;  %s1199_s12 = smov 0   ;;  %s1201_s13 = smov 0  }
   0x4   :  { %s1203_s14 = smov 0   ;;  %s1205_s15 = smov 0  }
   0x5   :  { %s1207_s16 = smov 0   ;;  %s1209_s17 = smov 0  }
   0x6   :  { %s1211_s18 = smov 0   ;;  %s1213_s19 = smov 0  }
   0x7   :  { %s1215_s20 = smov 0   ;;  %s1217_s21 = smov 0  }
   0x8   :  { %s1219_s22 = smov 0  }
   0x9 LB: > { %1523 = sst [smem:[#allocation8_spill]] %s1166_s21  ;;  %s778_s23 = sadd.s32 4294967295, %s1170_s22   ;;  %s1170_s22 = sphi %s1219_s22, %s19_s22   ;;  %s1166_s21 = sphi %s1217_s21, %s1537_s21   ;;  %s1162_s20 = sphi %s1215_s20, %s1545_s20   ;;  %s1158_s19 = sphi %s1213_s19, %s1535_s19   ;;  %s1154_s18 = sphi %s1211_s18, %s1544_s18   ;;  %s1150_s17 = sphi %s1209_s17, %s1543_s17   ;;  %s1146_s16 = sphi %s1207_s16, %s1542_s16   ;;  %s1142_s15 = sphi %s1205_s15, %s1541_s15   ;;  %s1138_s14 = sphi %s1203_s14, %s1540_s14   ;;  %s1134_s13 = sphi %s1201_s13, %s1539_s13   ;;  %s1130_s12 = sphi %s1199_s12, %s1538_s12  }
   0xa   : > { %s779_s24 = sadd.s32 4294967294, %s1170_s22   ;;  %s31_s25 = sadd.s32 1, %s1162_s20 }
   0xb   : > { %s38_s26 = sadd.s32 1, %s1166_s21  ;;  %p32_p0 = scmp.ge.s32.totalorder %s31_s25, 5 }
   0xc   : > { %s49_s27 = sadd.s32 1, %s1150_s17  ;;  %p56_p1 = scmp.ne.s32.totalorder %s1150_s17, %s1146_s16 }
   0xd   : > { %p57_p2 = scmp.eq.s32.totalorder %s1170_s22, 0  ;;  %s1547_s25 = smov (%p32_p0, %s31_s25), 0 }
   0xe   : > { %1524 = sst [smem:[#allocation9_spill]] %s1547_s25  ;;  %s1549_s26 = smov (!%p32_p0, %s38_s26), %s1166_s21 }
   0xf   : > { %s42_s28 = ssub.s32 %s1162_s20, %s1547_s25  ;;  %p1265_p3 = por %p57_p2, %p56_p1 }
  0x10   : > { %p40_p4 = scmp.ge.s32.totalorder %s1549_s26, 2  ;;  %p62_p5 = scmp.ne.s32.totalorder %s1146_s16, %s1142_s15 }
  0x11   : > { %p63_p6 = scmp.eq.s32.totalorder %s778_s23, 0  ;;  %s127_s30 = sadd.s32 1, %s1138_s14 }
  0x12   : > { %s1551_s26 = smov (%p40_p4, %s1549_s26), 0  ;;  %p137_p8 = scmp.ne.s32.totalorder %s1138_s14, %s1134_s13 }
  0x13   : > { %1526 = sst [smem:[#allocation10_spill]] %s1551_s26  ;;  %p1273_p7 = por %p63_p6, %p62_p5 }
  0x14   : > { %s43_s5 = ssub.s32 %s1166_s21, %s1551_s26  ;;  %p138_p9 = scmp.eq.s32.totalorder %s778_s23, 9 }
  0x15   : > { %s44_s6 = sor.u32 %s43_s5, %s42_s28  ;;  %p125_p10 = scmp.eq.s32.totalorder %s43_s5, 0 }
  0x16   : > { %p47_p11 = scmp.eq.s32.totalorder %s44_s6, 0  ;;  %p1281_p12 = por %p138_p9, %p137_p8 }
  0x17   : > { %s1286_s8 = scalar_select %p125_p10, %s1138_s14, %s127_s30  }
  0x18   : > { %s1289_s9 = scalar_select %p47_p11, %s1150_s17, %s49_s27  }
  0x19   : > { %1529 = sst [smem:[#allocation11_spill]] %s1286_s8  ;;  %p143_p13 = scmp.ne.s32.totalorder %s1134_s13, %s1130_s12 }
  0x1a   : > { %1530 = sst [smem:[#allocation12_spill]] %s1289_s9  ;;  %p144_p0 = scmp.eq.s32.totalorder %s779_s24, 9 }
  0x1b   : > { %p923_p1 = scmp.lt.s32.totalorder %s1170_s22, 10  ;;  %s173_s11 = sand.u32 1, %s1150_s17  }
  0x1c   : > { %p1294_p2 = por %p144_p0, %p143_p13  ;;  %s783_s15 = sshll.u32 %s173_s11, 5 }
  0x1d   : > { %s784_s23 = sshll.u32 %s1166_s21, 3  ;;  %s785_s28 = sshll.u32 %s1162_s20, 4 }
  0x1e   : > { %s177_s5 = scalar_lea.vmem [#allocation2], %s783_s15  ;;  %s184_s26 = sadd.s32 %s785_s28, %s784_s23 }
  0x1f   : > { %s187_s6 = sshll.u32 %s177_s5, 4  ;;  %s786_s25 = sshll.u32 %s184_s26, 6  ;;  %s188_s6 = int_to_ptr.vmem [resolvable:$true] %s187_s6 }
  0x20   : > { %p1303_p4 = pnand %p923_p1, %p1265_p3  ;;  %s186_s9 = scalar_lea.hbm %s1516_s0, %s786_s25 }
  0x21   : > { %s174_s8 = scalar_lea.sflag [#allocation3], %s173_s11  ;;  %s1035_s21 = scalar_lea.vmem %s188_s6, 512 }
  0x22   : > { %p1024_p5 = pneg %p1303_p4  ;;  %p1036_p6 = scmp.ne.s32.totalorder %s188_s6, %s1035_s21 }
  0x23   : > { %s1172_s15 = smov [#allocation2]  }
  0x24   : > { %p1038_p8 = pnand %p1036_p6, %p1024_p5  ;;  %s1040_s23 = sshll.u32 %s1172_s15, 4  ;;  %s1041_s23 = int_to_ptr.vmem [resolvable:$false] %s1040_s23 }
  0x25   : > { %s1042_s26 = scalar_lea.vmem %s1041_s23, 1024  ;;  %p1043_p3 = scmp.lt.s32.totalorder %s188_s6, %s1041_s23 }
  0x26   : > { %p1039_p9 = pneg %p1038_p8  ;;  %p1044_p10 = scmp.lt.s32.totalorder %s1042_s26, %s1035_s21 }
  0x28   : > { %p1045_p11 = por %p1044_p10, %p1043_p3 }
  0x2a   : > { %p1046_p13 = pnand %p1045_p11, %p1039_p9 }
  0x2c   : > { %1049 = shalt.err (!%p1046_p13)
}
  0x2d   : > { %s1173_s29 = smov 64   ;;  %s1174_s25 = smov 4  }
  0x2e   : > { %918 = dma.hbm_to_vmem [thread:$0]  (!%p1303_p4), %s186_s9, 512, %s188_s6, %s174_s8, %s1173_s29, %s1173_s29, %s1174_s25  }
  0x2f   : > { %p787_p0 = scmp.ge.s32.totalorder %s1170_s22, 1  ;;  %p203_p1 = scmp.lt.s32.totalorder %s1170_s22, 11 }
  0x31   : > { %p204_p5 = pnand %p787_p0, %p203_p1 }
  0x32   : > { %s209_s11 = sand.u32 (!%p204_p5), 1, %s1146_s16  }
  0x33   : > { %207 = sbr.rel (%p204_p5) target bundleno = 575 (0x23f), region = 32  ;;  %s788_s28 = sshll.u32 (!%p204_p5), %s209_s11, 5 }
  0x34   : > { %s210_s5 = scalar_lea.sflag (!%p204_p5), [#allocation3], %s209_s11  ;;  %s1317_s21 = scalar_lea.vmem (!%p204_p5), [#allocation2], %s788_s28 }
  0x38   : > { %1121 = dma.done.wait (%p1273_p7), %s210_s5, 512  }
  0x39   : > { %1123 = vsyncadd (%p1273_p7), %s210_s5, 4294966784  ;;  %s243_s8 = sand.u32 1, %s1134_s13   ;;  %p253_p4 = scmp.lt.s32.totalorder %s1154_s18, 4 }
  0x3a   : > { %s789_s9 = sshll.u32 %s243_s8, 6  ;;  %p261_p6 = scmp.eq.s32.totalorder %s1154_s18, 0 }
  0x3b   : > { %s254_s6 = scalar_select %p253_p4, %s1154_s18, 4  ;;  %v1175_v0 = vmov (%p261_p6), 0.0  }
  0x3c   : > { %s1332_s23 = scalar_lea.vmem [#allocation5], %s789_s9  ;;  %265 = sbr.rel (!%p261_p6) target bundleno = 65 (0x41), region = 40 }
  0x3d   : > { %s819_s27 = sshll.u32 %s254_s6, 5  ;;  %266 = vst [vmem:[%s1332_s23] sm:$0xff] (%p261_p6), %v1175_v0  ;;  %267 = vst [vmem:[%s1332_s23 + $0x8] sm:$0xff] (%p261_p6), %v1175_v0 }
  0x3e   : > { %s257_s15 = scalar_lea.vmem %s1518_s2, %s819_s27  ;;  %268 = vst [vmem:[%s1332_s23 + $0x10] sm:$0xff] (%p261_p6), %v1175_v0  ;;  %269 = vst [vmem:[%s1332_s23 + $0x18] sm:$0xff] (%p261_p6), %v1175_v0 }
  0x3f   : > { %270 = vst [vmem:[%s1332_s23 + $0x20] sm:$0xff] (%p261_p6), %v1175_v0  ;;  %271 = vst [vmem:[%s1332_s23 + $0x28] sm:$0xff] (%p261_p6), %v1175_v0 }
  0x40   : > { %272 = vst [vmem:[%s1332_s23 + $0x30] sm:$0xff] (%p261_p6), %v1175_v0  ;;  %273 = vst [vmem:[%s1332_s23 + $0x38] sm:$0xff] (%p261_p6), %v1175_v0 }
  0x41 PF: > { %v293_v1 = vld [vmem:[%s257_s15 + $0x18] sm:$0xff]  ;;  %v292_v2 = vld [vmem:[%s257_s15 + $0x10] sm:$0xff]  ;;  %vm294_vm0 = vcmask 261120   ;;  %v274_v3 = vld [vmem:[%s1517_s1] sm:$0xff]  ;;  %p617_p7 = scmp.eq.s32.totalorder %s1154_s18, 4 }
  0x42   : > { %855 = vmatprep.subr.mxu0 %v293_v1  ;;  %v291_v4 = vld [vmem:[%s257_s15 + $0x8] sm:$0xff]  ;;  %863 = vmatprep.mubr.msk.f32.mxu0 %vm294_vm0, %v274_v3  ;;  %v290_v5 = vld [vmem:[%s257_s15] sm:$0xff]  ;;  %v276_v7 = vld [vmem:[%s1517_s1 + $0x10] sm:$0xff] }
  0x43   : > { %856 = vmatpush3.msra.mxu0 %v293_v1  ;;  %v275_v6 = vld [vmem:[%s1517_s1 + $0x8] sm:$0xff]  ;;  %v277_v8 = vld [vmem:[%s1517_s1 + $0x18] sm:$0xff]  ;;  %v278_v9 = vld [vmem:[%s1517_s1 + $0x20] sm:$0xff] }
  0x44   : > { %857 = vmatprep.subr.mxu0 %v292_v2  ;;  %v279_v10 = vld [vmem:[%s1517_s1 + $0x28] sm:$0xff]  ;;  %v280_v11 = vld [vmem:[%s1517_s1 + $0x30] sm:$0xff]  ;;  %v281_v12 = vld [vmem:[%s1517_s1 + $0x38] sm:$0xff] }
  0x45   : > { %858 = vmatpush3.msra.mxu0 %v292_v2  ;;  %v282_v13 = vld [vmem:[%s1517_s1 + $0x40] sm:$0xff]  ;;  %v283_v14 = vld [vmem:[%s1517_s1 + $0x48] sm:$0xff]  ;;  %v284_v15 = vld [vmem:[%s1517_s1 + $0x50] sm:$0xff] }
  0x46   : > { %859 = vmatprep.subr.mxu0 %v291_v4  ;;  %v285_v16 = vld [vmem:[%s1517_s1 + $0x58] sm:$0xff]  ;;  %v286_v17 = vld [vmem:[%s1517_s1 + $0x60] sm:$0xff]  ;;  %v287_v18 = vld [vmem:[%s1517_s1 + $0x68] sm:$0xff] }
  0x47   : > { %860 = vmatpush3.msra.mxu0 %v291_v4  ;;  %v288_v19 = vld [vmem:[%s1517_s1 + $0x70] sm:$0xff]  ;;  %v289_v20 = vld [vmem:[%s1517_s1 + $0x78] sm:$0xff]  ;;  %v1018_v21 = vld [vmem:[%s1317_s21] sm:$0xff]  }
  0x48   : > { %861 = vmatprep.subr.mxu0 %v290_v5  ;;  %903 = vmatprep.mubr.bf16.mxu1 %v1018_v21  ;;  %v1019_v46 = vld [vmem:[%s1317_s21 + $0x8] sm:$0xff]   ;;  %v1020_v47 = vld [vmem:[%s1317_s21 + $0x10] sm:$0xff]   ;;  %v1021_v48 = vld [vmem:[%s1317_s21 + $0x18] sm:$0xff]  }
  0x49   : > { %862 = vmatpush3.msra.mxu0 %v290_v5  ;;  %v490_v49 = vld [vmem:[%s1332_s23 + $0x10] sm:$0xff]  ;;  %v488_v51 = vld [vmem:[%s1332_s23] sm:$0xff]  ;;  %v491_v54 = vld [vmem:[%s1332_s23 + $0x18] sm:$0xff] }
  0x4a   : > { %864 = vmatmul.mubr.msk.f32.vlgmr.msra.gmra.mxu0 %vm294_vm0, %v275_v6  ;;  %v489_v57 = vld [vmem:[%s1332_s23 + $0x8] sm:$0xff]  ;;  %v494_v60 = vld [vmem:[%s1332_s23 + $0x30] sm:$0xff]  ;;  %v492_v63 = vld [vmem:[%s1332_s23 + $0x20] sm:$0xff] }
  0x4b   : > { %866 = vmatprep.mubr.msk.f32.mxu0 %vm294_vm0, %v276_v7  ;;  %v495_v2 = vld [vmem:[%s1332_s23 + $0x38] sm:$0xff]  ;;  %v493_v5 = vld [vmem:[%s1332_s23 + $0x28] sm:$0xff] }
  0x4e   : > { %867 = vmatmul.mubr.msk.f32.gmra.mxu0 %vm294_vm0, %v277_v8 }
  0x4f   : > { %869 = vmatprep.mubr.msk.f32.mxu0 %vm294_vm0, %v278_v9 }
  0x52   : > { %870 = vmatmul.mubr.msk.f32.gmra.mxu0 %vm294_vm0, %v279_v10 }
  0x53   : > { %872 = vmatprep.mubr.msk.f32.mxu0 %vm294_vm0, %v280_v11 }
  0x56   : > { %873 = vmatmul.mubr.msk.f32.gmra.mxu0 %vm294_vm0, %v281_v12 }
  0x57   : > { %875 = vmatprep.mubr.msk.f32.mxu0 %vm294_vm0, %v282_v13 }
  0x5a   : > { %876 = vmatmul.mubr.msk.f32.gmra.mxu0 %vm294_vm0, %v283_v14 }
  0x5b   : > { %878 = vmatprep.mubr.msk.f32.mxu0 %vm294_vm0, %v284_v15 }
  0x5e   : > { %879 = vmatmul.mubr.msk.f32.gmra.mxu0 %vm294_vm0, %v285_v16 }
  0x5f   : > { %881 = vmatprep.mubr.msk.f32.mxu0 %vm294_vm0, %v286_v17 }
  0x62   : > { %882 = vmatmul.mubr.msk.f32.gmra.mxu0 %vm294_vm0, %v287_v18 }
  0x63   : > { %884 = vmatprep.mubr.msk.f32.mxu0 %vm294_vm0, %v288_v19 }
  0x66   : > { %885 = vmatmul.mubr.msk.f32.gmra.mxu0 %vm294_vm0, %v289_v20 }
 0x10a   : > { %v865_v22 = vpop.f32.mrf.mxu0 }
 0x10c   : > { %v409_v23 = vpop.f32.mrf.mxu0 }
 0x10d   : > { %v504_v45 = vpack.c.bf16 %v865_v22, %v409_v23 }
 0x10e   : > { %v868_v24 = vpop.f32.mrf.mxu0 }
 0x110   : > { %v419_v25 = vpop.f32.mrf.mxu0 }
 0x111   : > { %v505_v44 = vpack.c.bf16 %v868_v24, %v419_v25 }
 0x112   : > { %v871_v26 = vpop.f32.mrf.mxu0 }
 0x114   : > { %v429_v27 = vpop.f32.mrf.mxu0 }
 0x115   : > { %v506_v43 = vpack.c.bf16 %v871_v26, %v429_v27 }
 0x116   : > { %v874_v28 = vpop.f32.mrf.mxu0 }
 0x118   : > { %v439_v29 = vpop.f32.mrf.mxu0 }
 0x119   : > { %v507_v42 = vpack.c.bf16 %v874_v28, %v439_v29 }
 0x11a   : > { %v877_v30 = vpop.f32.mrf.mxu0 }
 0x11c   : > { %v449_v31 = vpop.f32.mrf.mxu0 }
 0x11d   : > { %v508_v41 = vpack.c.bf16 %v877_v30, %v449_v31 }
 0x11e   : > { %v880_v32 = vpop.f32.mrf.mxu0 }
 0x120   : > { %v459_v33 = vpop.f32.mrf.mxu0 }
 0x121   : > { %v509_v40 = vpack.c.bf16 %v880_v32, %v459_v33 }
 0x122   : > { %v883_v34 = vpop.f32.mrf.mxu0 }
 0x124   : > { %v469_v35 = vpop.f32.mrf.mxu0 }
 0x125   : > { %v510_v39 = vpack.c.bf16 %v883_v34, %v469_v35 }
 0x126   : > { %v886_v36 = vpop.f32.mrf.mxu0 }
 0x128   : > { %v479_v37 = vpop.f32.mrf.mxu0 }
 0x129   : > { %v511_v38 = vpack.c.bf16 %v886_v36, %v479_v37 }
 0x12b   : > { %887 = vmatprep.subr.bf16.mxu1 %v511_v38 }
 0x12c   : > { %888 = vmatpush3.bf16.msra.mxu1 %v511_v38 }
 0x12d   : > { %889 = vmatprep.subr.bf16.mxu1 %v510_v39 }
 0x130   : > { %890 = vmatpush3.bf16.msra.mxu1 %v510_v39 }
 0x131   : > { %891 = vmatprep.subr.bf16.mxu1 %v509_v40 }
 0x134   : > { %892 = vmatpush3.bf16.msra.mxu1 %v509_v40 }
 0x135   : > { %893 = vmatprep.subr.bf16.mxu1 %v508_v41 }
 0x138   : > { %894 = vmatpush3.bf16.msra.mxu1 %v508_v41 }
 0x139   : > { %895 = vmatprep.subr.bf16.mxu1 %v507_v42 }
 0x13c   : > { %896 = vmatpush3.bf16.msra.mxu1 %v507_v42 }
 0x13d   : > { %897 = vmatprep.subr.bf16.mxu1 %v506_v43 }
 0x140   : > { %898 = vmatpush3.bf16.msra.mxu1 %v506_v43 }
 0x141   : > { %899 = vmatprep.subr.bf16.mxu1 %v505_v44 }
 0x144   : > { %900 = vmatpush3.bf16.msra.mxu1 %v505_v44 }
 0x145   : > { %901 = vmatprep.subr.bf16.mxu1 %v504_v45 }
 0x148   : > { %902 = vmatpush3.bf16.msra.mxu1 %v504_v45 }
 0x14b   : > { %904 = vmatmul.mubr.bf16.vlgmr.msra.gmra.mxu1 %v1019_v46 }
 0x14c   : > { %907 = vmatprep.mubr.bf16.mxu1 %v1020_v47 }
 0x153   : > { %908 = vmatmul.mubr.bf16.gmra.mxu1 %v1021_v48 }
 0x20b   : > { %v905_v50 = vpop.f32.mrf.mxu1 }
 0x20c   : > { %v603_v52 = vadd.f32 %v905_v50, %v490_v49 }
 0x20d   : > { %v570_v53 = vpop.f32.mrf.mxu1 }
 0x20e   : > { %611 = vst [vmem:[%s1332_s23 + $0x10] sm:$0xff] %v603_v52  ;;  %v601_v55 = vadd.f32 %v570_v53, %v488_v51 }
 0x20f   : > { %v906_v56 = vpop.f32.mrf.mxu1 }
 0x210   : > { %609 = vst [vmem:[%s1332_s23] sm:$0xff] %v601_v55  ;;  %v604_v58 = vadd.f32 %v906_v56, %v491_v54 }
 0x211   : > { %v573_v59 = vpop.f32.mrf.mxu1 }
 0x212   : > { %612 = vst [vmem:[%s1332_s23 + $0x18] sm:$0xff] %v604_v58  ;;  %v602_v61 = vadd.f32 %v573_v59, %v489_v57 }
 0x213   : > { %v909_v62 = vpop.f32.mrf.mxu1 }
 0x214   : > { %610 = vst [vmem:[%s1332_s23 + $0x8] sm:$0xff] %v602_v61  ;;  %v607_v0 = vadd.f32 %v909_v62, %v494_v60 }
 0x215   : > { %v586_v1 = vpop.f32.mrf.mxu1  ;;  %v624_v11 = vld [vmem:[%s1332_s23 + $0x10] sm:$0xff] (%p617_p7) }
 0x216   : > { %615 = vst [vmem:[%s1332_s23 + $0x30] sm:$0xff] %v607_v0  ;;  %v605_v3 = vadd.f32 %v586_v1, %v492_v63  ;;  %v632_v14 = vmax.f32 (%p617_p7), %v624_v11, 0.0 }
 0x217   : > { %v910_v4 = vpop.f32.mrf.mxu1  ;;  %v622_v9 = vld [vmem:[%s1332_s23] sm:$0xff] (%p617_p7) }
 0x218   : > { %613 = vst [vmem:[%s1332_s23 + $0x20] sm:$0xff] %v605_v3  ;;  %v608_v6 = vadd.f32 %v910_v4, %v495_v2  ;;  %621 = sbr.rel (!%p617_p7) target bundleno = 551 (0x227), region = 44  ;;  %v630_v12 = vmax.f32 (%p617_p7), %v622_v9, 0.0  ;;  %640 = vst [vmem:[%s1332_s23 + $0x10] sm:$0xff] (%p617_p7), %v632_v14 }
 0x219   : > { %v589_v7 = vpop.f32.mrf.mxu1  ;;  %v625_v15 = vld [vmem:[%s1332_s23 + $0x18] sm:$0xff] (%p617_p7) }
 0x21a   : > { %616 = vst [vmem:[%s1332_s23 + $0x38] sm:$0xff] %v608_v6  ;;  %v606_v8 = vadd.f32 %v589_v7, %v493_v5  ;;  %v633_v18 = vmax.f32 (%p617_p7), %v625_v15, 0.0  ;;  %638 = vst [vmem:[%s1332_s23] sm:$0xff] (%p617_p7), %v630_v12 }
 0x21b   : > { %v623_v10 = vld [vmem:[%s1332_s23 + $0x8] sm:$0xff] (%p617_p7) }
 0x21c   : > { %614 = vst [vmem:[%s1332_s23 + $0x28] sm:$0xff] %v606_v8  ;;  %v631_v13 = vmax.f32 (%p617_p7), %v623_v10, 0.0  ;;  %641 = vst [vmem:[%s1332_s23 + $0x18] sm:$0xff] (%p617_p7), %v633_v18 }
 0x21d   : > { %v628_v21 = vld [vmem:[%s1332_s23 + $0x30] sm:$0xff] }
 0x21e   : > { %639 = vst [vmem:[%s1332_s23 + $0x8] sm:$0xff] %v631_v13  ;;  %v636_v23 = vmax.f32 %v628_v21, 0.0 }
 0x21f   : > { %v626_v16 = vld [vmem:[%s1332_s23 + $0x20] sm:$0xff] }
 0x220   : > { %v634_v19 = vmax.f32 %v626_v16, 0.0  ;;  %644 = vst [vmem:[%s1332_s23 + $0x30] sm:$0xff] %v636_v23 }
 0x221   : > { %v629_v22 = vld [vmem:[%s1332_s23 + $0x38] sm:$0xff] }
 0x222   : > { %v637_v24 = vmax.f32 %v629_v22, 0.0  ;;  %642 = vst [vmem:[%s1332_s23 + $0x20] sm:$0xff] %v634_v19 }
 0x223   : > { %v627_v17 = vld [vmem:[%s1332_s23 + $0x28] sm:$0xff] }
 0x224   : > { %v635_v20 = vmax.f32 %v627_v17, 0.0  ;;  %645 = vst [vmem:[%s1332_s23 + $0x38] sm:$0xff] %v637_v24 }
 0x226   : > { %643 = vst [vmem:[%s1332_s23 + $0x28] sm:$0xff] %v635_v20 }
 0x227 PF: > { %s822_s18 = sshll.u32 %s1158_s19, 10  ;;  %s660_s6 = sshll.u32 %s1332_s23, 4  ;;  %s1452_s6 = int_to_ptr.vmem [resolvable:$true] %s660_s6 }
 0x228   : > { %s1449_s9 = scalar_lea.hbm %s1519_s3, %s822_s18  ;;  %s1456_s27 = scalar_lea.sflag [#allocation4], %s243_s8 }
 0x229   : > { %s1050_s24 = scalar_lea.vmem %s1452_s6, 1024  ;;  %s1176_s19 = smov [#allocation5]  }
 0x22a   : > { %p1051_p8 = scmp.ne.s32.totalorder %s1452_s6, %s1050_s24  ;;  %s1054_s30 = sshll.u32 %s1176_s19, 4  ;;  %s1055_s30 = int_to_ptr.vmem [resolvable:$false] %s1054_s30 }
 0x22b   : > { %s1056_s15 = scalar_lea.vmem %s1055_s30, 2048  ;;  %p1057_p10 = scmp.lt.s32.totalorder %s1452_s6, %s1055_s30 }
 0x22c   : > { %p1052_p9 = pnand %p1051_p8, %p1281_p12  ;;  %p1058_p11 = scmp.lt.s32.totalorder %s1056_s15, %s1050_s24 }
 0x22e   : > { %p1053_p3 = pneg %p1052_p9  ;;  %p1059_p13 = por %p1058_p11, %p1057_p10 }
 0x230   : > { %p1060_p0 = pnand %p1059_p13, %p1053_p3 }
 0x232   : > { %1063 = shalt.err (!%p1060_p0)
}
 0x233   : > { %s1064_s8 = scalar_lea.hbm %s1449_s9, 1024  ;;  %s1068_s26 = scalar_lea.hbm %s1519_s3, 2048 }
 0x234   : > { %p1065_p1 = scmp.ne.s32.totalorder %s1449_s9, %s1064_s8  ;;  %p1069_p6 = scmp.lt.s32.totalorder %s1449_s9, %s1519_s3 }
 0x235   : > { %p1070_p7 = scmp.lt.s32.totalorder %s1068_s26, %s1064_s8 }
 0x236   : > { %p1066_p5 = pnand %p1065_p1, %p1281_p12 }
 0x237   : > { %p1071_p8 = por %p1070_p7, %p1069_p6 }
 0x238   : > { %p1067_p4 = pneg %p1066_p5 }
 0x23a   : > { %p1072_p9 = pnand %p1071_p8, %p1067_p4 }
 0x23c   : > { %1075 = shalt.err (!%p1072_p9)
}
 0x23d   : > { %s1177_s11 = smov 128   ;;  %s1178_s28 = smov 8  }
 0x23e   : > { %913 = dma.vmem_to_hbm [thread:$0]  (%p1281_p12), %s1452_s6, 1024, %s1449_s9, %s1456_s27, %s1177_s11, %s1177_s11, %s1178_s28  }
 0x23f PF: > { %p924_p3 = scmp.ge.s32.totalorder %s1170_s22, 2  ;;  %s675_s18 = sand.u32 1, %s1130_s12  }
 0x240   : > { %s676_s21 = scalar_lea.sflag [#allocation4], %s675_s18 }
 0x241   : > { %p920_p10 = pnand %p924_p3, %p1294_p2 }
 0x243   : > { %p921_p11 = pneg %p920_p10 }
 0x245   : > { %1125 = dma.done.wait (%p921_p11), %s676_s21, 1024  }
 0x246   : > { %1127 = vsyncadd (%p921_p11), %s676_s21, 4294966272  ;;  %s19_s22 = sadd.s32 1, %s1170_s22   ;;  %s1533_s5 = sld [smem:[#allocation11_spill]] }
 0x247   : > { %p16_p13 = scmp.ge.s32.totalorder %s19_s22, 12   ;;  %s1534_s7 = sld [smem:[#allocation12_spill]] }
 0x248   : > { %s1535_s19 = sld [smem:[#allocation8_spill]]  ;;  %s1538_s12 = smov %s1134_s13 }
 0x249   : > { %s1536_s9 = sld [smem:[#allocation9_spill]]  ;;  %s1539_s13 = smov %s1138_s14 }
 0x24a   : > { %s1537_s21 = sld [smem:[#allocation10_spill]]  ;;  %s1541_s15 = smov %s1146_s16 }
 0x24b   : > { %s1542_s16 = smov %s1150_s17  ;;  %s1544_s18 = smov %s1162_s20 }
 0x24c   : > { %s1540_s14 = smov %s1533_s5  ;;  %18 = sbr.rel (!%p16_p13) target bundleno = 9 (0x9), region = 91 }
 0x24d   : > { %s1543_s17 = smov %s1534_s7 }
 0x24f   : > { %s1545_s20 = smov %s1536_s9 }
 0x251   :  { %681 = vsyncpa [#allocation3], 1 }
 0x252   :  { %683 = vsyncpa [#allocation3 + $0x1], 1 }
 0x253   :  { %684 = vsyncpa [#allocation4], 1 }
 0x254   :  { %686 = vsyncpa [#allocation4 + $0x1], 1 }

</bundles_post_ra>
